<compile_context>
chip_gen: v7x
topology: tpu7x:2x2x1
jax: 0.10.0
libtpu: 0.0.40
codegen_flags: <defaults>
</compile_context>

<pallas_src>
import functools

import jax
import jax.numpy as jnp
from jax.experimental import pallas as pl
from jax.experimental.pallas import tpu as pltpu

EPS = 1e-5


def _round_up(x, m):
    return (x + m - 1) // m * m


# ----------------- pass 1: conv-as-matmul + global sum / sumsq -----------------
def _conv_stats_kernel(p_ref, w_ref, y_ref, stats_ref):
    """p_ref: (TM, Kp) bf16 patches, w_ref: (Kp, N) bf16 combined weight.
    y_ref: (TM, N) f32 raw activations.  stats_ref: (2, N) f32 accumulator
    (row 0 = sum, row 1 = sum of squares), resident across the grid axis."""
    i = pl.program_id(0)
    y = jnp.dot(p_ref[...], w_ref[...], preferred_element_type=jnp.float32)
    y_ref[...] = y

    @pl.when(i == 0)
    def _():
        stats_ref[...] = jnp.zeros_like(stats_ref)

    partial = jnp.concatenate(
        [jnp.sum(y, axis=0, keepdims=True),
         jnp.sum(y * y, axis=0, keepdims=True)], axis=0)
    stats_ref[...] += partial


# ------------- pass 2: fused BN scale/shift + ReLU + branch add -----------------
def _norm_kernel(y_ref, scale_ref, shift_ref, o_ref, *, c_pad):
    """y_ref: (TM, 2*c_pad) raw activations (large branch | small branch).
    scale/shift: (1, 2*c_pad) folded BN affine.  o_ref: (TM, c_pad)."""
    z = jnp.maximum(y_ref[...] * scale_ref[...] + shift_ref[...], 0.0)
    o_ref[...] = z[:, :c_pad] + z[:, c_pad:]


# ------------------------------ JAX glue ---------------------------------------
def _im2col_nhwc(x_nhwc, k):
    """(B, H, W, Cin) -> (B*H*W, k*k*Cin), 'same' padding (pad = k // 2)."""
    b, h, w, cin = x_nhwc.shape
    pad = k // 2
    xp = jnp.pad(x_nhwc, ((0, 0), (pad, pad), (pad, pad), (0, 0)))
    cols = [xp[:, kh:kh + h, kw:kw + w, :] for kh in range(k) for kw in range(k)]
    patches = jnp.concatenate(cols, axis=-1)          # (B, H, W, k*k*Cin)
    return patches.reshape(b * h * w, k * k * cin)


def _flatten_weight_oihw(w_oihw):
    """(Cout, Cin, K, K) -> (K*K*Cin, Cout), matching im2col tap order."""
    cout, cin, kh, kw = w_oihw.shape
    return jnp.transpose(w_oihw, (2, 3, 1, 0)).reshape(kh * kw * cin, cout)


@functools.partial(jax.jit, static_argnames=("large_kernel", "small_kernel"))
def large_kernel_forward(x_nchw, params, *, large_kernel, small_kernel):
    assert large_kernel % 2 == 1 and small_kernel % 2 == 1   # 'same' pad needs odd k
    assert small_kernel <= large_kernel

    b, cin, h, w = x_nchw.shape
    cout = params["wl"].shape[0]

    m = b * h * w
    kdim = large_kernel * large_kernel * cin
    kdim_pad = _round_up(kdim, 128)       # lane-aligned contraction dim
    c_pad = _round_up(cout, 128)          # lane-dense per-branch channel slab
    n_tot = 2 * c_pad                     # [large branch | small branch]

    tm = 256 if m >= 256 else _round_up(m, 8)
    m_pad = _round_up(m, tm)
    n_tiles = m_pad // tm

    # --- im2col once (large-kernel taps), pad rows & lanes, cast to bf16 ---
    x_nhwc = jnp.transpose(x_nchw, (0, 2, 3, 1)).astype(jnp.float32)
    patches = _im2col_nhwc(x_nhwc, large_kernel)                       # (M, kdim)
    patches = jnp.pad(patches, ((0, m_pad - m), (0, kdim_pad - kdim)))
    patches = patches.astype(jnp.bfloat16)

    # --- combined weight: 3x3 zero-embedded into the 5x5 tap layout ---
    off = (large_kernel - small_kernel) // 2
    ws_emb = jnp.pad(params["ws"], ((0, 0), (0, 0), (off, off), (off, off)))
    wl_flat = _flatten_weight_oihw(params["wl"])                       # (kdim, cout)
    ws_flat = _flatten_weight_oihw(ws_emb)                             # (kdim, cout)
    w_comb = jnp.zeros((kdim_pad, n_tot), jnp.float32)
    w_comb = w_comb.at[:kdim, :cout].set(wl_flat)
    w_comb = w_comb.at[:kdim, c_pad:c_pad + cout].set(ws_flat)
    w_comb = w_comb.astype(jnp.bfloat16)
    # Conv bias intentionally dropped: cancelled exactly by BN mean subtraction.

    # --- pass 1: tiled conv matmul + global per-channel sum / sumsq ---
    y, stats = pl.pallas_call(
        _conv_stats_kernel,
        out_shape=(jax.ShapeDtypeStruct((m_pad, n_tot), jnp.float32),
                   jax.ShapeDtypeStruct((2, n_tot), jnp.float32)),
        grid=(n_tiles,),
        in_specs=[pl.BlockSpec((tm, kdim_pad), lambda i: (i, 0)),
                  pl.BlockSpec((kdim_pad, n_tot), lambda i: (0, 0))],
        out_specs=(pl.BlockSpec((tm, n_tot), lambda i: (i, 0)),
                   pl.BlockSpec((2, n_tot), lambda i: (0, 0))),
        compiler_params=pltpu.CompilerParams(
            dimension_semantics=("arbitrary",)),
    )(patches, w_comb)

    # --- finalize BN: fold (gamma, beta, mean, var) -> per-channel scale/shift ---
    # Zero-padded rows contribute nothing to sum/sumsq; divide by the true M.
    gamma = jnp.zeros((n_tot,), jnp.float32)
    beta = jnp.zeros((n_tot,), jnp.float32)
    gamma = gamma.at[:cout].set(params["g1"]).at[c_pad:c_pad + cout].set(params["g2"])
    beta = beta.at[:cout].set(params["be1"]).at[c_pad:c_pad + cout].set(params["be2"])
    mean = stats[0] / m
    var = jnp.maximum(stats[1] / m - mean * mean, 0.0)
    scale = (gamma * jax.lax.rsqrt(var + EPS)).reshape(1, n_tot)
    shift = (beta - mean * (gamma * jax.lax.rsqrt(var + EPS))).reshape(1, n_tot)

    # --- pass 2: per-tile normalize + ReLU + branch add (lane-dense output) ---
    out = pl.pallas_call(
        functools.partial(_norm_kernel, c_pad=c_pad),
        out_shape=jax.ShapeDtypeStruct((m_pad, c_pad), jnp.float32),
        grid=(n_tiles,),
        in_specs=[pl.BlockSpec((tm, n_tot), lambda i: (i, 0)),
                  pl.BlockSpec((1, n_tot), lambda i: (0, 0)),
                  pl.BlockSpec((1, n_tot), lambda i: (0, 0))],
        out_specs=pl.BlockSpec((tm, c_pad), lambda i: (i, 0)),
        compiler_params=pltpu.CompilerParams(
            dimension_semantics=("parallel",)),
    )(y, scale, shift)

    out = out[:m, :cout].reshape(b, h, w, cout)
    return jnp.transpose(out, (0, 3, 1, 2))           # back to NCHW


# --------------------------- pure-JAX reference -------------------------------
def _reference(x_nchw, params, large_kernel, small_kernel):
    def branch(wt, bias, g, be, k):
        y = jax.lax.conv_general_dilated(
            x_nchw, wt, window_strides=(1, 1),
            padding=[(k // 2, k // 2), (k // 2, k // 2)],
            dimension_numbers=("NCHW", "OIHW", "NCHW"))
        y = y + bias[None, :, None, None]
        mean = y.mean(axis=(0, 2, 3), keepdims=True)
        var = ((y - mean) ** 2).mean(axis=(0, 2, 3), keepdims=True)
        yn = (y - mean) / jnp.sqrt(var + EPS)
        yn = yn * g[None, :, None, None] + be[None, :, None, None]
        return jax.nn.relu(yn)

    return (branch(params["wl"], params["bl"], params["g1"], params["be1"], large_kernel)
            + branch(params["ws"], params["bs"], params["g2"], params["be2"], small_kernel))


# --------------------------------- main ---------------------------------------
if __name__ == "__main__":
    B, CIN, COUT, H, W = 2, 4, 8, 16, 16
    LARGE_K, SMALL_K = 5, 3

    key = jax.random.PRNGKey(0)
    ks = jax.random.split(key, 7)
    params = {
        "wl": 0.1 * jax.random.normal(ks[0], (COUT, CIN, LARGE_K, LARGE_K), jnp.float32),
        "bl": 0.1 * jax.random.normal(ks[1], (COUT,), jnp.float32),
        "ws": 0.1 * jax.random.normal(ks[2], (COUT, CIN, SMALL_K, SMALL_K), jnp.float32),
        "bs": 0.1 * jax.random.normal(ks[3], (COUT,), jnp.float32),
        "g1": 1.0 + 0.1 * jax.random.normal(ks[4], (COUT,), jnp.float32),
        "be1": jnp.zeros((COUT,), jnp.float32),
        "g2": 1.0 + 0.1 * jax.random.normal(ks[5], (COUT,), jnp.float32),
        "be2": jnp.zeros((COUT,), jnp.float32),
    }
    x = jax.random.normal(ks[6], (B, CIN, H, W), jnp.float32)

    out = large_kernel_forward(x, params, large_kernel=LARGE_K, small_kernel=SMALL_K)
    out = jax.block_until_ready(out)

    ref = _reference(x, params, LARGE_K, SMALL_K)
    assert out.shape == (B, COUT, H, W)
    max_err = float(jnp.max(jnp.abs(out - ref)))
    # bf16 MXU operands -> looser tolerance than pure-f32 path.
    assert jnp.allclose(out, ref, rtol=5e-2, atol=5e-2), max_err

    print("KERNEL_OK")
</pallas_src>

<mosaic_0001>
module attributes {stable_mosaic.version = 11 : i64} {
  func.func @_conv_stats_kernel(%arg0: i32, %arg1: memref<256x128xbf16, #tpu.memory_space<vmem>>, %arg2: memref<128x256xbf16, #tpu.memory_space<vmem>>, %arg3: memref<256x256xf32, #tpu.memory_space<vmem>>, %arg4: memref<2x256xf32, #tpu.memory_space<vmem>>) attributes {dimension_semantics = [#tpu.dimension_semantics<arbitrary>], iteration_bounds = array<i64: 2>, scalar_prefetch = 0 : i64, scratch_operands = 0 : i64, tpu.core_type = #tpu.core_type<tc>, window_params = [{transform_indices = @transform_0, window_bounds = array<i64: 256, 128>}, {pipeline_mode = #tpu.pipeline_mode<synchronous>, transform_indices = @transform_1, window_bounds = array<i64: 128, 256>}, {transform_indices = @transform_2, window_bounds = array<i64: 256, 256>}, {pipeline_mode = #tpu.pipeline_mode<synchronous>, transform_indices = @transform_3, window_bounds = array<i64: 2, 256>}]} {
    %c0 = arith.constant 0 : index
    %c0_0 = arith.constant 0 : index
    %0 = vector.load %arg1[%c0, %c0_0] : memref<256x128xbf16, #tpu.memory_space<vmem>>, vector<256x128xbf16>
    %c0_1 = arith.constant 0 : index
    %c0_2 = arith.constant 0 : index
    %1 = vector.load %arg2[%c0_1, %c0_2] : memref<128x256xbf16, #tpu.memory_space<vmem>>, vector<128x256xbf16>
    %cst = arith.constant dense<0.000000e+00> : vector<256x256xf32>
    %2 = tpu.matmul %0, %1, %cst {dimension_numbers = #tpu.dot_dimension_numbers<[1], [0], [0], [1], [0, 0, 1, 1], [], []>} : vector<256x128xbf16>, vector<128x256xbf16>, vector<256x256xf32> -> vector<256x256xf32>
    %c0_3 = arith.constant 0 : index
    %c0_4 = arith.constant 0 : index
    %3 = vector.load %arg3[%c0_3, %c0_4] : memref<256x256xf32, #tpu.memory_space<vmem>>, vector<256x256xf32>
    tpu.vector_store %arg3[%c0_3, %c0_4], %2 {strides = array<i32>} : memref<256x256xf32, #tpu.memory_space<vmem>>, vector<256x256xf32>,
    %c0_i32 = arith.constant 0 : i32
    %4 = arith.cmpi eq, %arg0, %c0_i32 : i32
    %5 = arith.extui %4 : i1 to i32
    %c0_i32_5 = arith.constant 0 : i32
    %6 = arith.cmpi ne, %5, %c0_i32_5 : i32
    scf.if %6 {
      %cst_12 = arith.constant 0.000000e+00 : f32
      %16 = vector.broadcast %cst_12 : f32 to vector<2x256xf32>
      %c0_13 = arith.constant 0 : index
      %c0_14 = arith.constant 0 : index
      %17 = vector.load %arg4[%c0_13, %c0_14] : memref<2x256xf32, #tpu.memory_space<vmem>>, vector<2x256xf32>
      tpu.vector_store %arg4[%c0_13, %c0_14], %16 {strides = array<i32>} : memref<2x256xf32, #tpu.memory_space<vmem>>, vector<2x256xf32>,
    } else {
    }
    %cst_6 = arith.constant dense<0.000000e+00> : vector<256xf32>
    %7 = vector.multi_reduction <add>, %2, %cst_6 [0] : vector<256x256xf32> to vector<256xf32>
    %8 = vector.shape_cast %7 : vector<256xf32> to vector<1x256xf32>
    %9 = arith.mulf %2, %2 : vector<256x256xf32>
    %cst_7 = arith.constant dense<0.000000e+00> : vector<256xf32>
    %10 = vector.multi_reduction <add>, %9, %cst_7 [0] : vector<256x256xf32> to vector<256xf32>
    %11 = vector.shape_cast %10 : vector<256xf32> to vector<1x256xf32>
    %12 = tpu.concatenate %8, %11 in 0 : vector<1x256xf32>, vector<1x256xf32> -> vector<2x256xf32>
    %c0_8 = arith.constant 0 : index
    %c0_9 = arith.constant 0 : index
    %13 = vector.load %arg4[%c0_8, %c0_9] : memref<2x256xf32, #tpu.memory_space<vmem>>, vector<2x256xf32>
    %14 = arith.addf %13, %12 : vector<2x256xf32>
    %c0_10 = arith.constant 0 : index
    %c0_11 = arith.constant 0 : index
    %15 = vector.load %arg4[%c0_10, %c0_11] : memref<2x256xf32, #tpu.memory_space<vmem>>, vector<2x256xf32>
    tpu.vector_store %arg4[%c0_10, %c0_11], %14 {strides = array<i32>} : memref<2x256xf32, #tpu.memory_space<vmem>>, vector<2x256xf32>,
    return
  }
  func.func @transform_0(%arg0: i32) -> (i32, i32) {
    %c0_i32 = arith.constant 0 : i32
    %c0_i32_0 = arith.constant 0 : i32
    return %arg0, %c0_i32 : i32, i32
  }
  func.func @transform_1(%arg0: i32) -> (i32, i32) {
    %c0_i32 = arith.constant 0 : i32
    %c0_i32_0 = arith.constant 0 : i32
    %c0_i32_1 = arith.constant 0 : i32
    return %c0_i32, %c0_i32_0 : i32, i32
  }
  func.func @transform_2(%arg0: i32) -> (i32, i32) {
    %c0_i32 = arith.constant 0 : i32
    %c0_i32_0 = arith.constant 0 : i32
    return %arg0, %c0_i32 : i32, i32
  }
  func.func @transform_3(%arg0: i32) -> (i32, i32) {
    %c0_i32 = arith.constant 0 : i32
    %c0_i32_0 = arith.constant 0 : i32
    %c0_i32_1 = arith.constant 0 : i32
    return %c0_i32, %c0_i32_0 : i32, i32
  }
}

module attributes {stable_mosaic.version = 11 : i64} {
  func.func @_norm_kernel(%arg0: i32, %arg1: memref<256x256xf32, #tpu.memory_space<vmem>>, %arg2: memref<1x256xf32, #tpu.memory_space<vmem>>, %arg3: memref<1x256xf32, #tpu.memory_space<vmem>>, %arg4: memref<256x128xf32, #tpu.memory_space<vmem>>) attributes {dimension_semantics = [#tpu.dimension_semantics<parallel>], iteration_bounds = array<i64: 2>, scalar_prefetch = 0 : i64, scratch_operands = 0 : i64, tpu.core_type = #tpu.core_type<tc>, window_params = [{transform_indices = @transform_0, window_bounds = array<i64: 256, 256>}, {pipeline_mode = #tpu.pipeline_mode<synchronous>, transform_indices = @transform_1, window_bounds = array<i64: 1, 256>}, {pipeline_mode = #tpu.pipeline_mode<synchronous>, transform_indices = @transform_2, window_bounds = array<i64: 1, 256>}, {transform_indices = @transform_3, window_bounds = array<i64: 256, 128>}]} {
    %c0 = arith.constant 0 : index
    %c0_0 = arith.constant 0 : index
    %0 = vector.load %arg1[%c0, %c0_0] : memref<256x256xf32, #tpu.memory_space<vmem>>, vector<256x256xf32>
    %c0_1 = arith.constant 0 : index
    %c0_2 = arith.constant 0 : index
    %1 = vector.load %arg2[%c0_1, %c0_2] : memref<1x256xf32, #tpu.memory_space<vmem>>, vector<1x256xf32>
    %2 = vector.broadcast %1 : vector<1x256xf32> to vector<256x256xf32>
    %3 = arith.mulf %0, %2 : vector<256x256xf32>
    %c0_3 = arith.constant 0 : index
    %c0_4 = arith.constant 0 : index
    %4 = vector.load %arg3[%c0_3, %c0_4] : memref<1x256xf32, #tpu.memory_space<vmem>>, vector<1x256xf32>
    %5 = vector.broadcast %4 : vector<1x256xf32> to vector<256x256xf32>
    %6 = arith.addf %3, %5 : vector<256x256xf32>
    %cst = arith.constant 0.000000e+00 : f32
    %7 = vector.broadcast %cst : f32 to vector<256x256xf32>
    %8 = arith.maximumf %6, %7 : vector<256x256xf32>
    %9 = vector.extract_strided_slice %8 {offsets = [0, 0], sizes = [256, 128], strides = [1, 1]} : vector<256x256xf32> to vector<256x128xf32>
    %10 = vector.extract_strided_slice %8 {offsets = [0, 128], sizes = [256, 128], strides = [1, 1]} : vector<256x256xf32> to vector<256x128xf32>
    %11 = arith.addf %9, %10 : vector<256x128xf32>
    %c0_5 = arith.constant 0 : index
    %c0_6 = arith.constant 0 : index
    %12 = vector.load %arg4[%c0_5, %c0_6] : memref<256x128xf32, #tpu.memory_space<vmem>>, vector<256x128xf32>
    tpu.vector_store %arg4[%c0_5, %c0_6], %11 {strides = array<i32>} : memref<256x128xf32, #tpu.memory_space<vmem>>, vector<256x128xf32>,
    return
  }
  func.func @transform_0(%arg0: i32) -> (i32, i32) {
    %c0_i32 = arith.constant 0 : i32
    %c0_i32_0 = arith.constant 0 : i32
    return %arg0, %c0_i32 : i32, i32
  }
  func.func @transform_1(%arg0: i32) -> (i32, i32) {
    %c0_i32 = arith.constant 0 : i32
    %c0_i32_0 = arith.constant 0 : i32
    %c0_i32_1 = arith.constant 0 : i32
    return %c0_i32, %c0_i32_0 : i32, i32
  }
  func.func @transform_2(%arg0: i32) -> (i32, i32) {
    %c0_i32 = arith.constant 0 : i32
    %c0_i32_0 = arith.constant 0 : i32
    %c0_i32_1 = arith.constant 0 : i32
    return %c0_i32, %c0_i32_0 : i32, i32
  }
  func.func @transform_3(%arg0: i32) -> (i32, i32) {
    %c0_i32 = arith.constant 0 : i32
    %c0_i32_0 = arith.constant 0 : i32
    return %arg0, %c0_i32 : i32, i32
  }
}

</mosaic_0001>

<bundles_post_ra>
// kernel: large_kernel_forward.2
= control target key start
LH: loop header
LB: loop body
LE: loop exit
PB: predicated region body
PF: predicated region fallthrough
CT: control target
= control target key end

     0   :  { %s1098_s12 = smov 0   ;;  %s1664_s0 = inlined_call_operand.vmem [shape: bf16[512,128], index: 0, kind: input, shape index: {}]   ;;  %s1665_s1 = inlined_call_operand.vmem [shape: bf16[128,256], index: 1, kind: input, shape index: {}]   ;;  %s1666_s2 = inlined_call_operand.vmem [shape: f32[512,256], index: 2, kind: output, shape index: {0}]   ;;  %s1667_s3 = inlined_call_operand.vmem [shape: f32[2,256], index: 3, kind: output, shape index: {1}]  }
   0x1 LB: > { %s954_s13 = sadd.s32 4294967295, %s1073_s12   ;;  %p958_p0 = scmp.ge.s32.totalorder %s1073_s12, 1  ;;  %s1073_s12 = sphi %s1098_s12, %s14_s12  }
   0x2   : > { %p136_p1 = scmp.lt.s32.totalorder %s1073_s12, 3 }
   0x4   : > { %p137_p2 = pnand %p958_p0, %p136_p1 }
   0x6   : > { %140 = sbr.rel (%p137_p2) target bundleno = 423 (0x1a7), region = 28 }
   0xd   : > { %v1027_v0 = vld [vmem:[%s1665_s1 + $0x4] ss:$8 sps:$4 sm:$0xff]   ;;  %s959_s16 = sshll.u32 %s954_s13, 5  ;;  %v1029_v1 = vld [vmem:[%s1665_s1] ss:$8 sps:$4 sm:$0xff]   ;;  %v1075_v2 = vmov 0  }
   0xe   : > { %431 = vmatprep.mubr.bf16.mxu0 %v1075_v2  ;;  %511 = vmatprep.mubr.bf16.mxu1 %v1075_v2  ;;  %p162_p3 = scmp.lt.s32.totalorder %s959_s16, 63  ;;  %v1030_v3 = vld [vmem:[%s1665_s1 + $0x14] ss:$8 sps:$4 sm:$0xff]   ;;  %v1032_v4 = vld [vmem:[%s1665_s1 + $0x10] ss:$8 sps:$4 sm:$0xff]   ;;  %p996_p4 = scmp.ne.s32.totalorder %s954_s13, 0 }
   0xf   : > { %399 = vmatprep.subr.bf16.mxu0 %v1027_v0  ;;  %1000 = vmatprep.subr.bf16.mxu1 %v1027_v0  ;;  %v1033_v5 = vld [vmem:[%s1665_s1 + $0x24] ss:$8 sps:$4 sm:$0xff]   ;;  %v1035_v6 = vld [vmem:[%s1665_s1 + $0x20] ss:$8 sps:$4 sm:$0xff]   ;;  %v1036_v7 = vld [vmem:[%s1665_s1 + $0x34] ss:$8 sps:$4 sm:$0xff]  }
  0x10   : > { %400 = vmatpush1.bf16.msra.mxu0 %v1029_v1  ;;  %1008 = vmatpush1.bf16.msra.mxu1 %v1029_v1  ;;  %s1721_s16 = smov (!%p162_p3, %s959_s16), 63  ;;  %v1038_v8 = vld [vmem:[%s1665_s1 + $0x30] ss:$8 sps:$4 sm:$0xff]   ;;  %v1039_v9 = vld [vmem:[%s1665_s1 + $0x44] ss:$8 sps:$4 sm:$0xff]  }
  0x11   : > { %401 = vmatprep.subr.bf16.mxu0 %v1030_v3  ;;  %1001 = vmatprep.subr.bf16.mxu1 %v1030_v3  ;;  %s960_s25 = sshll.u32 %s1721_s16, 2  ;;  %v1041_v10 = vld [vmem:[%s1665_s1 + $0x40] ss:$8 sps:$4 sm:$0xff]   ;;  %v1042_v11 = vld [vmem:[%s1665_s1 + $0x54] ss:$8 sps:$4 sm:$0xff]   ;;  %s999_s27 = sshll.u32 %s1721_s16, 4 }
  0x12   : > { %s1137_s5 = scalar_lea.vmem %s1664_s0, %s960_s25  ;;  %v1044_v12 = vld [vmem:[%s1665_s1 + $0x50] ss:$8 sps:$4 sm:$0xff]   ;;  %v1045_v13 = vld [vmem:[%s1665_s1 + $0x64] ss:$8 sps:$4 sm:$0xff]   ;;  %v1047_v14 = vld [vmem:[%s1665_s1 + $0x60] ss:$8 sps:$4 sm:$0xff]   ;;  %s1200_s30 = scalar_lea.vmem %s1666_s2, %s999_s27 }
  0x13   : > { %v1048_v15 = vld [vmem:[%s1665_s1 + $0x74] ss:$8 sps:$4 sm:$0xff]   ;;  %v1050_v16 = vld [vmem:[%s1665_s1 + $0x70] ss:$8 sps:$4 sm:$0xff]   ;;  %v1051_v17 = vld [vmem:[%s1137_s5] sm:$0xff]  }
  0x14   : > { %402 = vmatpush1.bf16.msra.mxu0 %v1032_v4  ;;  %1009 = vmatpush1.bf16.msra.mxu1 %v1032_v4  ;;  %v1052_v18 = vld [vmem:[%s1137_s5 + $0x40] sm:$0xff]   ;;  %v1053_v19 = vld [vmem:[%s1137_s5 + $0x8] sm:$0xff]   ;;  %v1055_v21 = vld [vmem:[%s1137_s5 + $0x10] sm:$0xff]  }
  0x15   : > { %403 = vmatprep.subr.bf16.mxu0 %v1033_v5  ;;  %1002 = vmatprep.subr.bf16.mxu1 %v1033_v5  ;;  %v1054_v20 = vld [vmem:[%s1137_s5 + $0x48] sm:$0xff]   ;;  %v1056_v22 = vld [vmem:[%s1137_s5 + $0x50] sm:$0xff]   ;;  %v1057_v23 = vld [vmem:[%s1137_s5 + $0x18] sm:$0xff]  }
  0x16   : > { %v1058_v24 = vld [vmem:[%s1137_s5 + $0x58] sm:$0xff]   ;;  %v1059_v25 = vld [vmem:[%s1137_s5 + $0x20] sm:$0xff]   ;;  %v1061_v27 = vld [vmem:[%s1137_s5 + $0x28] sm:$0xff]  }
  0x17   : > { %v1060_v26 = vld [vmem:[%s1137_s5 + $0x60] sm:$0xff]   ;;  %v1062_v28 = vld [vmem:[%s1137_s5 + $0x68] sm:$0xff]   ;;  %v1063_v29 = vld [vmem:[%s1137_s5 + $0x30] sm:$0xff]  }
  0x18   : > { %404 = vmatpush1.bf16.msra.mxu0 %v1035_v6  ;;  %1010 = vmatpush1.bf16.msra.mxu1 %v1035_v6  ;;  %v1064_v30 = vld [vmem:[%s1137_s5 + $0x70] sm:$0xff]   ;;  %v1065_v31 = vld [vmem:[%s1137_s5 + $0x38] sm:$0xff]  }
  0x19   : > { %405 = vmatprep.subr.bf16.mxu0 %v1036_v7  ;;  %1003 = vmatprep.subr.bf16.mxu1 %v1036_v7  ;;  %v1066_v32 = vld [vmem:[%s1137_s5 + $0x78] sm:$0xff]  }
  0x1c   : > { %406 = vmatpush1.bf16.msra.mxu0 %v1038_v8  ;;  %1011 = vmatpush1.bf16.msra.mxu1 %v1038_v8 }
  0x1d   : > { %407 = vmatprep.subr.bf16.mxu0 %v1039_v9  ;;  %1004 = vmatprep.subr.bf16.mxu1 %v1039_v9 }
  0x20   : > { %408 = vmatpush1.bf16.msra.mxu0 %v1041_v10  ;;  %1012 = vmatpush1.bf16.msra.mxu1 %v1041_v10 }
  0x21   : > { %409 = vmatprep.subr.bf16.mxu0 %v1042_v11  ;;  %1005 = vmatprep.subr.bf16.mxu1 %v1042_v11 }
  0x24   : > { %410 = vmatpush1.bf16.msra.mxu0 %v1044_v12  ;;  %1013 = vmatpush1.bf16.msra.mxu1 %v1044_v12 }
  0x25   : > { %411 = vmatprep.subr.bf16.mxu0 %v1045_v13  ;;  %1006 = vmatprep.subr.bf16.mxu1 %v1045_v13 }
  0x28   : > { %412 = vmatpush1.bf16.msra.mxu0 %v1047_v14  ;;  %1014 = vmatpush1.bf16.msra.mxu1 %v1047_v14 }
  0x29   : > { %413 = vmatprep.subr.bf16.mxu0 %v1048_v15  ;;  %1007 = vmatprep.subr.bf16.mxu1 %v1048_v15 }
  0x2c   : > { %414 = vmatpush1.bf16.msra.mxu0 %v1050_v16  ;;  %1015 = vmatpush1.bf16.msra.mxu1 %v1050_v16 }
  0x2f   : > { %432 = vmatmul.mubr.bf16.vlgmr.msra.gmra.mrb[0].mxu0 %v1051_v17  ;;  %512 = vmatmul.mubr.bf16.vlgmr.msra.gmra.mrb[0].mxu1 %v1052_v18 }
  0x30   : > { %441 = vmatprep.mubr.bf16.mxu0 %v1075_v2  ;;  %521 = vmatprep.mubr.bf16.mxu1 %v1075_v2 }
  0x37   : > { %442 = vmatmul.mubr.bf16.gmra.mrb[4].mxu0 %v1053_v19  ;;  %522 = vmatmul.mubr.bf16.gmra.mrb[4].mxu1 %v1054_v20 }
  0x38   : > { %451 = vmatprep.mubr.bf16.mxu0 %v1075_v2  ;;  %531 = vmatprep.mubr.bf16.mxu1 %v1075_v2 }
  0x3f   : > { %452 = vmatmul.mubr.bf16.gmra.mrb[8].mxu0 %v1055_v21  ;;  %532 = vmatmul.mubr.bf16.gmra.mrb[8].mxu1 %v1056_v22 }
  0x40   : > { %461 = vmatprep.mubr.bf16.mxu0 %v1075_v2  ;;  %541 = vmatprep.mubr.bf16.mxu1 %v1075_v2 }
  0x47   : > { %462 = vmatmul.mubr.bf16.gmra.mrb[12].mxu0 %v1057_v23  ;;  %542 = vmatmul.mubr.bf16.gmra.mrb[12].mxu1 %v1058_v24 }
  0x48   : > { %471 = vmatprep.mubr.bf16.mxu0 %v1075_v2  ;;  %551 = vmatprep.mubr.bf16.mxu1 %v1075_v2 }
  0x4f   : > { %472 = vmatmul.mubr.bf16.gmra.mrb[16].mxu0 %v1059_v25  ;;  %552 = vmatmul.mubr.bf16.gmra.mrb[16].mxu1 %v1060_v26 }
  0x50   : > { %481 = vmatprep.mubr.bf16.mxu0 %v1075_v2  ;;  %561 = vmatprep.mubr.bf16.mxu1 %v1075_v2 }
  0x57   : > { %482 = vmatmul.mubr.bf16.gmra.mrb[20].mxu0 %v1061_v27  ;;  %562 = vmatmul.mubr.bf16.gmra.mrb[20].mxu1 %v1062_v28 }
  0x58   : > { %491 = vmatprep.mubr.bf16.mxu0 %v1075_v2  ;;  %571 = vmatprep.mubr.bf16.mxu1 %v1075_v2 }
  0x5f   : > { %492 = vmatmul.mubr.bf16.gmra.mrb[24].mxu0 %v1063_v29  ;;  %572 = vmatmul.mubr.bf16.gmra.mrb[24].mxu1 %v1064_v30 }
  0x60   : > { %501 = vmatprep.mubr.bf16.mxu0 %v1075_v2  ;;  %581 = vmatprep.mubr.bf16.mxu1 %v1075_v2 }
  0x67   : > { %502 = vmatmul.mubr.bf16.gmra.mrb[28].mxu0 %v1065_v31  ;;  %582 = vmatmul.mubr.bf16.gmra.mrb[28].mxu1 %v1066_v32 }
 0x102   : > { %v1202_v33 = vpop.f32.mrb[0].mxu0  ;;  %v1204_v34 = vpop.f32.mrb[0].mxu1 }
 0x103   : > { %592 = vst [vmem:[%s1200_s30] sm:$0xff] %v1202_v33  ;;  %624 = vst [vmem:[%s1200_s30 + $0x100] sm:$0xff] %v1204_v34  ;;  %v1210_v35 = vpop.f32.mrb[1].mxu0  ;;  %v1212_v36 = vpop.f32.mrb[1].mxu1 }
 0x104   : > { %593 = vst [vmem:[%s1200_s30 + $0x8] sm:$0xff] %v1210_v35  ;;  %625 = vst [vmem:[%s1200_s30 + $0x108] sm:$0xff] %v1212_v36  ;;  %v1218_v37 = vpop.f32.mrb[2].mxu0  ;;  %v1220_v38 = vpop.f32.mrb[2].mxu1 }
 0x105   : > { %594 = vst [vmem:[%s1200_s30 + $0x10] sm:$0xff] %v1218_v37  ;;  %626 = vst [vmem:[%s1200_s30 + $0x110] sm:$0xff] %v1220_v38  ;;  %v1226_v39 = vpop.f32.mrb[3].mxu0  ;;  %v1228_v40 = vpop.f32.mrb[3].mxu1 }
 0x106   : > { %595 = vst [vmem:[%s1200_s30 + $0x18] sm:$0xff] %v1226_v39  ;;  %627 = vst [vmem:[%s1200_s30 + $0x118] sm:$0xff] %v1228_v40 }
 0x10a   : > { %v1234_v41 = vpop.f32.mrb[4].mxu0  ;;  %v1236_v42 = vpop.f32.mrb[4].mxu1 }
 0x10b   : > { %596 = vst [vmem:[%s1200_s30 + $0x20] sm:$0xff] %v1234_v41  ;;  %628 = vst [vmem:[%s1200_s30 + $0x120] sm:$0xff] %v1236_v42  ;;  %v1242_v43 = vpop.f32.mrb[5].mxu0  ;;  %v1244_v44 = vpop.f32.mrb[5].mxu1 }
 0x10c   : > { %597 = vst [vmem:[%s1200_s30 + $0x28] sm:$0xff] %v1242_v43  ;;  %629 = vst [vmem:[%s1200_s30 + $0x128] sm:$0xff] %v1244_v44  ;;  %v1250_v45 = vpop.f32.mrb[6].mxu0  ;;  %v1252_v46 = vpop.f32.mrb[6].mxu1 }
 0x10d   : > { %598 = vst [vmem:[%s1200_s30 + $0x30] sm:$0xff] %v1250_v45  ;;  %630 = vst [vmem:[%s1200_s30 + $0x130] sm:$0xff] %v1252_v46  ;;  %v1258_v47 = vpop.f32.mrb[7].mxu0  ;;  %v1260_v48 = vpop.f32.mrb[7].mxu1 }
 0x10e   : > { %599 = vst [vmem:[%s1200_s30 + $0x38] sm:$0xff] %v1258_v47  ;;  %631 = vst [vmem:[%s1200_s30 + $0x138] sm:$0xff] %v1260_v48 }
 0x112   : > { %v1266_v49 = vpop.f32.mrb[8].mxu0  ;;  %v1268_v50 = vpop.f32.mrb[8].mxu1 }
 0x113   : > { %600 = vst [vmem:[%s1200_s30 + $0x40] sm:$0xff] %v1266_v49  ;;  %632 = vst [vmem:[%s1200_s30 + $0x140] sm:$0xff] %v1268_v50  ;;  %v1274_v51 = vpop.f32.mrb[9].mxu0  ;;  %v1276_v52 = vpop.f32.mrb[9].mxu1 }
 0x114   : > { %601 = vst [vmem:[%s1200_s30 + $0x48] sm:$0xff] %v1274_v51  ;;  %633 = vst [vmem:[%s1200_s30 + $0x148] sm:$0xff] %v1276_v52  ;;  %v1282_v53 = vpop.f32.mrb[10].mxu0  ;;  %v1284_v54 = vpop.f32.mrb[10].mxu1 }
 0x115   : > { %602 = vst [vmem:[%s1200_s30 + $0x50] sm:$0xff] %v1282_v53  ;;  %634 = vst [vmem:[%s1200_s30 + $0x150] sm:$0xff] %v1284_v54  ;;  %v1290_v55 = vpop.f32.mrb[11].mxu0  ;;  %v1292_v56 = vpop.f32.mrb[11].mxu1 }
 0x116   : > { %603 = vst [vmem:[%s1200_s30 + $0x58] sm:$0xff] %v1290_v55  ;;  %635 = vst [vmem:[%s1200_s30 + $0x158] sm:$0xff] %v1292_v56 }
 0x11a   : > { %v1298_v57 = vpop.f32.mrb[12].mxu0  ;;  %v1300_v58 = vpop.f32.mrb[12].mxu1 }
 0x11b   : > { %604 = vst [vmem:[%s1200_s30 + $0x60] sm:$0xff] %v1298_v57  ;;  %636 = vst [vmem:[%s1200_s30 + $0x160] sm:$0xff] %v1300_v58  ;;  %v1306_v59 = vpop.f32.mrb[13].mxu0  ;;  %v1308_v60 = vpop.f32.mrb[13].mxu1 }
 0x11c   : > { %605 = vst [vmem:[%s1200_s30 + $0x68] sm:$0xff] %v1306_v59  ;;  %637 = vst [vmem:[%s1200_s30 + $0x168] sm:$0xff] %v1308_v60  ;;  %v1314_v61 = vpop.f32.mrb[14].mxu0  ;;  %v1316_v62 = vpop.f32.mrb[14].mxu1 }
 0x11d   : > { %606 = vst [vmem:[%s1200_s30 + $0x70] sm:$0xff] %v1314_v61  ;;  %638 = vst [vmem:[%s1200_s30 + $0x170] sm:$0xff] %v1316_v62  ;;  %v1322_v63 = vpop.f32.mrb[15].mxu0  ;;  %v1324_v0 = vpop.f32.mrb[15].mxu1 }
 0x11e   : > { %607 = vst [vmem:[%s1200_s30 + $0x78] sm:$0xff] %v1322_v63  ;;  %639 = vst [vmem:[%s1200_s30 + $0x178] sm:$0xff] %v1324_v0 }
 0x122   : > { %v1330_v1 = vpop.f32.mrb[16].mxu0  ;;  %v1332_v2 = vpop.f32.mrb[16].mxu1 }
 0x123   : > { %608 = vst [vmem:[%s1200_s30 + $0x80] sm:$0xff] %v1330_v1  ;;  %640 = vst [vmem:[%s1200_s30 + $0x180] sm:$0xff] %v1332_v2  ;;  %v1338_v3 = vpop.f32.mrb[17].mxu0  ;;  %v1340_v4 = vpop.f32.mrb[17].mxu1 }
 0x124   : > { %609 = vst [vmem:[%s1200_s30 + $0x88] sm:$0xff] %v1338_v3  ;;  %641 = vst [vmem:[%s1200_s30 + $0x188] sm:$0xff] %v1340_v4  ;;  %v1346_v5 = vpop.f32.mrb[18].mxu0  ;;  %v1348_v6 = vpop.f32.mrb[18].mxu1 }
 0x125   : > { %610 = vst [vmem:[%s1200_s30 + $0x90] sm:$0xff] %v1346_v5  ;;  %642 = vst [vmem:[%s1200_s30 + $0x190] sm:$0xff] %v1348_v6  ;;  %v1354_v7 = vpop.f32.mrb[19].mxu0  ;;  %v1356_v8 = vpop.f32.mrb[19].mxu1 }
 0x126   : > { %1694 = vst [vmem:[#allocation2_spill] sm:$0xff] %v1356_v8  ;;  %611 = vst [vmem:[%s1200_s30 + $0x98] sm:$0xff] %v1354_v7 }
 0x127   : > { %643 = vst [vmem:[%s1200_s30 + $0x198] sm:$0xff] %v1356_v8 }
 0x12a   : > { %v1362_v9 = vpop.f32.mrb[20].mxu0  ;;  %v1364_v10 = vpop.f32.mrb[20].mxu1 }
 0x12b   : > { %1695 = vst [vmem:[#allocation3_spill] sm:$0xff] %v1364_v10  ;;  %612 = vst [vmem:[%s1200_s30 + $0xa0] sm:$0xff] %v1362_v9  ;;  %v1370_v11 = vpop.f32.mrb[21].mxu0  ;;  %v1372_v12 = vpop.f32.mrb[21].mxu1 }
 0x12c   : > { %644 = vst [vmem:[%s1200_s30 + $0x1a0] sm:$0xff] %v1364_v10  ;;  %1696 = vst [vmem:[#allocation4_spill] sm:$0xff] %v1372_v12  ;;  %v1378_v13 = vpop.f32.mrb[22].mxu0  ;;  %v1380_v14 = vpop.f32.mrb[22].mxu1 }
 0x12d   : > { %613 = vst [vmem:[%s1200_s30 + $0xa8] sm:$0xff] %v1370_v11  ;;  %645 = vst [vmem:[%s1200_s30 + $0x1a8] sm:$0xff] %v1372_v12  ;;  %v1386_v15 = vpop.f32.mrb[23].mxu0  ;;  %v1388_v16 = vpop.f32.mrb[23].mxu1 }
 0x12e   : > { %1697 = vst [vmem:[#allocation5_spill] sm:$0xff] %v1380_v14  ;;  %614 = vst [vmem:[%s1200_s30 + $0xb0] sm:$0xff] %v1378_v13 }
 0x12f   : > { %646 = vst [vmem:[%s1200_s30 + $0x1b0] sm:$0xff] %v1380_v14  ;;  %1698 = vst [vmem:[#allocation6_spill] sm:$0xff] %v1388_v16 }
 0x130   : > { %615 = vst [vmem:[%s1200_s30 + $0xb8] sm:$0xff] %v1386_v15  ;;  %647 = vst [vmem:[%s1200_s30 + $0x1b8] sm:$0xff] %v1388_v16 }
 0x132   : > { %v1394_v17 = vpop.f32.mrb[24].mxu0  ;;  %v1396_v18 = vpop.f32.mrb[24].mxu1 }
 0x133   : > { %1699 = vst [vmem:[#allocation7_spill] sm:$0xff] %v1396_v18  ;;  %616 = vst [vmem:[%s1200_s30 + $0xc0] sm:$0xff] %v1394_v17  ;;  %v1402_v19 = vpop.f32.mrb[25].mxu0  ;;  %v1404_v20 = vpop.f32.mrb[25].mxu1 }
 0x134   : > { %648 = vst [vmem:[%s1200_s30 + $0x1c0] sm:$0xff] %v1396_v18  ;;  %1700 = vst [vmem:[#allocation8_spill] sm:$0xff] %v1404_v20  ;;  %v1410_v21 = vpop.f32.mrb[26].mxu0  ;;  %v1412_v22 = vpop.f32.mrb[26].mxu1 }
 0x135   : > { %617 = vst [vmem:[%s1200_s30 + $0xc8] sm:$0xff] %v1402_v19  ;;  %649 = vst [vmem:[%s1200_s30 + $0x1c8] sm:$0xff] %v1404_v20  ;;  %v1418_v23 = vpop.f32.mrb[27].mxu0  ;;  %v1420_v24 = vpop.f32.mrb[27].mxu1 }
 0x136   : > { %1701 = vst [vmem:[#allocation9_spill] sm:$0xff] %v1412_v22  ;;  %618 = vst [vmem:[%s1200_s30 + $0xd0] sm:$0xff] %v1410_v21 }
 0x137   : > { %650 = vst [vmem:[%s1200_s30 + $0x1d0] sm:$0xff] %v1412_v22  ;;  %1702 = vst [vmem:[#allocation10_spill] sm:$0xff] %v1420_v24 }
 0x138   : > { %619 = vst [vmem:[%s1200_s30 + $0xd8] sm:$0xff] %v1418_v23  ;;  %651 = vst [vmem:[%s1200_s30 + $0x1d8] sm:$0xff] %v1420_v24 }
 0x13a   : > { %v1426_v25 = vpop.f32.mrb[28].mxu0  ;;  %v1428_v26 = vpop.f32.mrb[28].mxu1  ;;  %659 = sbr.rel (%p996_p4) target bundleno = 322 (0x142), region = 32 }
 0x13b   : > { %1703 = vst [vmem:[#allocation11_spill] sm:$0xff] %v1428_v26  ;;  %620 = vst [vmem:[%s1200_s30 + $0xe0] sm:$0xff] %v1426_v25  ;;  %v1434_v27 = vpop.f32.mrb[29].mxu0  ;;  %v1436_v28 = vpop.f32.mrb[29].mxu1 }
 0x13c   : > { %652 = vst [vmem:[%s1200_s30 + $0x1e0] sm:$0xff] %v1428_v26  ;;  %1704 = vst [vmem:[#allocation12_spill] sm:$0xff] %v1436_v28  ;;  %v1442_v29 = vpop.f32.mrb[30].mxu0  ;;  %v1444_v30 = vpop.f32.mrb[30].mxu1 }
 0x13d   : > { %621 = vst [vmem:[%s1200_s30 + $0xe8] sm:$0xff] %v1434_v27  ;;  %653 = vst [vmem:[%s1200_s30 + $0x1e8] sm:$0xff] %v1436_v28  ;;  %v1450_v31 = vpop.f32.mrb[31].mxu0  ;;  %v1452_v32 = vpop.f32.mrb[31].mxu1  ;;  %v1076_v28 = vmov (!%p996_p4), 0.0  }
 0x13e   : > { %1705 = vst [vmem:[#allocation13_spill] sm:$0xff] %v1444_v30  ;;  %622 = vst [vmem:[%s1200_s30 + $0xf0] sm:$0xff] %v1442_v29 }
 0x13f   : > { %654 = vst [vmem:[%s1200_s30 + $0x1f0] sm:$0xff] %v1444_v30  ;;  %1706 = vst [vmem:[#allocation14_spill] sm:$0xff] %v1452_v32 }
 0x140   : > { %623 = vst [vmem:[%s1200_s30 + $0xf8] sm:$0xff] %v1450_v31  ;;  %655 = vst [vmem:[%s1200_s30 + $0x1f8] sm:$0xff] %v1452_v32 }
 0x141   : > { %660 = vst [vmem:[%s1667_s3] sm:$0xf] %v1076_v28 }
 0x142 PF: > { %v661_v30 = vadd.f32 %v1218_v37, %v1202_v33  ;;  %v698_v26 = vadd.f32 %v1226_v39, %v1210_v35  ;;  %vm873_vm0 = vcmask 1040384  }
 0x144   : > { %v662_v24 = vadd.f32 %v661_v30, %v1234_v41  ;;  %v699_v32 = vadd.f32 %v698_v26, %v1242_v43 }
 0x146   : > { %v663_v22 = vadd.f32 %v662_v24, %v1250_v45  ;;  %v700_v20 = vadd.f32 %v699_v32, %v1258_v47 }
 0x148   : > { %v664_v18 = vadd.f32 %v663_v22, %v1266_v49  ;;  %v701_v16 = vadd.f32 %v700_v20, %v1274_v51 }
 0x14a   : > { %v665_v28 = vadd.f32 %v664_v18, %v1282_v53  ;;  %v702_v14 = vadd.f32 %v701_v16, %v1290_v55  ;;  %v735_v18 = vmul.f32 %v1202_v33, %v1202_v33  ;;  %v736_v16 = vmul.f32 %v1210_v35, %v1210_v35 }
 0x14c   : > { %v666_v12 = vadd.f32 %v665_v28, %v1298_v57  ;;  %v703_v10 = vadd.f32 %v702_v14, %v1306_v59  ;;  %v737_v14 = vmul.f32 %v1218_v37, %v1218_v37  ;;  %v741_v37 = vmul.f32 %v1250_v45, %v1250_v45 }
 0x14e   : > { %v667_v30 = vadd.f32 %v666_v12, %v1314_v61  ;;  %v704_v26 = vadd.f32 %v703_v10, %v1322_v63  ;;  %v738_v10 = vmul.f32 %v1226_v39, %v1226_v39  ;;  %v742_v39 = vmul.f32 %v1258_v47, %v1258_v47 }
 0x14f   : > { %v745_v47 = vmul.f32 %v1282_v53, %v1282_v53 }
 0x150   : > { %v668_v24 = vadd.f32 %v667_v30, %v1330_v1  ;;  %v705_v32 = vadd.f32 %v704_v26, %v1338_v3  ;;  %v739_v30 = vmul.f32 %v1234_v41, %v1234_v41  ;;  %v740_v26 = vmul.f32 %v1242_v43, %v1242_v43 }
 0x151   : > { %v743_v41 = vmul.f32 %v1266_v49, %v1266_v49  ;;  %v744_v43 = vmul.f32 %v1274_v51, %v1274_v51  ;;  %v747_v51 = vmul.f32 %v1298_v57, %v1298_v57 }
 0x152   : > { %v669_v22 = vadd.f32 %v668_v24, %v1346_v5  ;;  %v706_v20 = vadd.f32 %v705_v32, %v1354_v7  ;;  %v799_v24 = vadd.f32 %v737_v14, %v735_v18  ;;  %v836_v32 = vadd.f32 %v738_v10, %v736_v16 }
 0x153   : > { %v746_v18 = vmul.f32 %v1290_v55, %v1290_v55  ;;  %v749_v55 = vmul.f32 %v1314_v61, %v1314_v61 }
 0x154   : > { %v670_v12 = vadd.f32 %v669_v22, %v1362_v9  ;;  %v707_v28 = vadd.f32 %v706_v20, %v1370_v11 }
 0x156   : > { %v671_v33 = vadd.f32 %v670_v12, %v1378_v13  ;;  %v708_v35 = vadd.f32 %v707_v28, %v1386_v15  ;;  %v800_v12 = vadd.f32 %v799_v24, %v739_v30  ;;  %v837_v28 = vadd.f32 %v836_v32, %v740_v26 }
 0x157   : > { %v748_v30 = vmul.f32 %v1306_v59, %v1306_v59  ;;  %v751_v59 = vmul.f32 %v1330_v1, %v1330_v1  ;;  %v752_v32 = vmul.f32 %v1338_v3, %v1338_v3  ;;  %v755_v3 = vmul.f32 %v1362_v9, %v1362_v9 }
 0x158   : > { %v672_v22 = vadd.f32 %v671_v33, %v1394_v17  ;;  %v709_v20 = vadd.f32 %v708_v35, %v1402_v19  ;;  %v801_v16 = vadd.f32 %v800_v12, %v741_v37  ;;  %v838_v14 = vadd.f32 %v837_v28, %v742_v39 }
 0x15a   : > { %v673_v8 = vadd.f32 %v672_v22, %v1410_v21  ;;  %v710_v45 = vadd.f32 %v709_v20, %v1418_v23  ;;  %v802_v26 = vadd.f32 %v801_v16, %v743_v41  ;;  %v839_v33 = vadd.f32 %v838_v14, %v744_v43 }
 0x15b   : > { %v754_v43 = vmul.f32 %v1354_v7, %v1354_v7  ;;  %v757_v7 = vmul.f32 %v1378_v13, %v1378_v13 }
 0x15c   : > { %v674_v10 = vadd.f32 %v673_v8, %v1426_v25  ;;  %v711_v49 = vadd.f32 %v710_v45, %v1434_v27  ;;  %v750_v8 = vmul.f32 %v1322_v63, %v1322_v63  ;;  %v803_v37 = vadd.f32 %v802_v26, %v745_v47 }
 0x15d   : > { %v840_v39 = vadd.f32 %v839_v33, %v746_v18  ;;  %v753_v63 = vmul.f32 %v1346_v5, %v1346_v5  ;;  %v756_v47 = vmul.f32 %v1370_v11, %v1370_v11  ;;  %v759_v11 = vmul.f32 %v1394_v17, %v1394_v17 }
 0x15e   : > { %v675_v35 = vadd.f32 %v674_v10, %v1442_v29  ;;  %v712_v53 = vadd.f32 %v711_v49, %v1450_v31  ;;  %v804_v22 = vadd.f32 %v803_v37, %v747_v51  ;;  %v758_v10 = vmul.f32 %v1386_v15, %v1386_v15 }
 0x15f   : > { %v841_v20 = vadd.f32 %v840_v39, %v748_v30  ;;  %v760_v26 = vmul.f32 %v1402_v19, %v1402_v19  ;;  %v761_v15 = vmul.f32 %v1410_v21, %v1410_v21  ;;  %v763_v19 = vmul.f32 %v1426_v25, %v1426_v25 }
 0x160   : > { %v676_v24 = vadd.f32 %v675_v35, %v1204_v34  ;;  %v713_v57 = vadd.f32 %v712_v53, %v1212_v36  ;;  %v805_v12 = vadd.f32 %v804_v22, %v749_v55  ;;  %v762_v55 = vmul.f32 %v1418_v23, %v1418_v23 }
 0x161   : > { %v842_v28 = vadd.f32 %v841_v20, %v750_v8  ;;  %v765_v23 = vmul.f32 %v1442_v29, %v1442_v29  ;;  %v766_v22 = vmul.f32 %v1450_v31, %v1450_v31  ;;  %v1707_v29 = vld [vmem:[#allocation2_spill] sm:$0xff]  ;;  %v769_v31 = vmul.f32 %v1220_v38, %v1220_v38 }
 0x162   : > { %v677_v41 = vadd.f32 %v676_v24, %v1220_v38  ;;  %v714_v61 = vadd.f32 %v713_v57, %v1228_v40  ;;  %v806_v18 = vadd.f32 %v805_v12, %v751_v59  ;;  %v764_v24 = vmul.f32 %v1434_v27, %v1434_v27  ;;  %v1711_v38 = vld [vmem:[#allocation6_spill] sm:$0xff] }
 0x163   : > { %v843_v16 = vadd.f32 %v842_v28, %v752_v32  ;;  %v767_v27 = vmul.f32 %v1204_v34, %v1204_v34  ;;  %v1709_v34 = vld [vmem:[#allocation4_spill] sm:$0xff] }
 0x164   : > { %v678_v45 = vadd.f32 %v677_v41, %v1236_v42  ;;  %v715_v1 = vadd.f32 %v714_v61, %v1244_v44  ;;  %v807_v49 = vadd.f32 %v806_v18, %v753_v63  ;;  %v768_v63 = vmul.f32 %v1212_v36, %v1212_v36  ;;  %v1708_v18 = vld [vmem:[#allocation3_spill] sm:$0xff] }
 0x165   : > { %v844_v51 = vadd.f32 %v843_v16, %v754_v43  ;;  %v771_v36 = vmul.f32 %v1236_v42, %v1236_v42  ;;  %v775_v42 = vmul.f32 %v1268_v50, %v1268_v50 }
 0x166   : > { %v679_v14 = vadd.f32 %v678_v45, %v1252_v46  ;;  %v716_v5 = vadd.f32 %v715_v1, %v1260_v48  ;;  %v808_v33 = vadd.f32 %v807_v49, %v755_v3  ;;  %v770_v1 = vmul.f32 %v1228_v40, %v1228_v40  ;;  %v1710_v49 = vld [vmem:[#allocation5_spill] sm:$0xff] }
 0x167   : > { %v845_v35 = vadd.f32 %v844_v51, %v756_v47  ;;  %v773_v40 = vmul.f32 %v1252_v46, %v1252_v46  ;;  %v777_v46 = vmul.f32 %v1284_v54, %v1284_v54 }
 0x168   : > { %v680_v30 = vadd.f32 %v679_v14, %v1268_v50  ;;  %v717_v9 = vadd.f32 %v716_v5, %v1276_v52  ;;  %v809_v8 = vadd.f32 %v808_v33, %v757_v7  ;;  %v772_v5 = vmul.f32 %v1244_v44, %v1244_v44  ;;  %v1712_v33 = vld [vmem:[#allocation7_spill] sm:$0xff] }
 0x169   : > { %v846_v37 = vadd.f32 %v845_v35, %v758_v10  ;;  %v776_v44 = vmul.f32 %v1276_v52, %v1276_v52  ;;  %v779_v50 = vmul.f32 %v1300_v58, %v1300_v58  ;;  %v780_v52 = vmul.f32 %v1308_v60, %v1308_v60 }
 0x16a   : > { %v681_v53 = vadd.f32 %v680_v30, %v1284_v54  ;;  %v718_v13 = vadd.f32 %v717_v9, %v1292_v56  ;;  %v810_v57 = vadd.f32 %v809_v8, %v759_v11  ;;  %v774_v9 = vmul.f32 %v1260_v48, %v1260_v48 }
 0x16b   : > { %v847_v59 = vadd.f32 %v846_v37, %v760_v26  ;;  %v778_v48 = vmul.f32 %v1292_v56, %v1292_v56  ;;  %v781_v54 = vmul.f32 %v1316_v62, %v1316_v62  ;;  %v782_v56 = vmul.f32 %v1324_v0, %v1324_v0 }
 0x16c   : > { %v682_v39 = vadd.f32 %v681_v53, %v1300_v58  ;;  %v719_v17 = vadd.f32 %v718_v13, %v1308_v60  ;;  %v811_v20 = vadd.f32 %v810_v57, %v761_v15  ;;  %v1713_v53 = vld [vmem:[#allocation8_spill] sm:$0xff]  ;;  %v783_v58 = vmul.f32 %v1332_v2, %v1332_v2 }
 0x16d   : > { %v848_v41 = vadd.f32 %v847_v59, %v762_v55  ;;  %v784_v60 = vmul.f32 %v1340_v4, %v1340_v4 }
 0x16e   : > { %v683_v32 = vadd.f32 %v682_v39, %v1316_v62  ;;  %v720_v21 = vadd.f32 %v719_v17, %v1324_v0  ;;  %v812_v43 = vadd.f32 %v811_v20, %v763_v19  ;;  %v1714_v39 = vld [vmem:[#allocation9_spill] sm:$0xff]  ;;  %v1715_v19 = vld [vmem:[#allocation10_spill] sm:$0xff]  ;;  %v1717_v20 = vld [vmem:[#allocation12_spill] sm:$0xff]  ;;  %v785_v62 = vmul.f32 %v1348_v6, %v1348_v6 }
 0x16f   : > { %v849_v12 = vadd.f32 %v848_v41, %v764_v24  ;;  %v786_v0 = vmul.f32 %v1707_v29, %v1707_v29 }
 0x170   : > { %v684_v61 = vadd.f32 %v683_v32, %v1332_v2  ;;  %v721_v25 = vadd.f32 %v720_v21, %v1340_v4  ;;  %v813_v3 = vadd.f32 %v812_v43, %v765_v23  ;;  %v1716_v23 = vld [vmem:[#allocation11_spill] sm:$0xff]  ;;  %v787_v2 = vmul.f32 %v1708_v18, %v1708_v18  ;;  %v1718_v43 = vld [vmem:[#allocation13_spill] sm:$0xff] }
 0x171   : > { %v850_v47 = vadd.f32 %v849_v12, %v766_v22  ;;  %v788_v4 = vmul.f32 %v1709_v34, %v1709_v34 }
 0x172   : > { %v685_v28 = vadd.f32 %v684_v61, %v1348_v6  ;;  %v722_v45 = vadd.f32 %v721_v25, %v1707_v29  ;;  %v814_v7 = vadd.f32 %v813_v3, %v767_v27  ;;  %v789_v6 = vmul.f32 %v1710_v49, %v1710_v49 }
 0x173   : > { %v851_v10 = vadd.f32 %v850_v47, %v768_v63  ;;  %v790_v29 = vmul.f32 %v1711_v38, %v1711_v38 }
 0x174   : > { %v686_v16 = vadd.f32 %v685_v28, %v1708_v18  ;;  %v723_v14 = vadd.f32 %v722_v45, %v1709_v34  ;;  %v815_v11 = vadd.f32 %v814_v7, %v769_v31  ;;  %v1719_v28 = vld [vmem:[#allocation14_spill] sm:$0xff]  ;;  %v791_v18 = vmul.f32 %v1712_v33, %v1712_v33 }
 0x175   : > { %v852_v26 = vadd.f32 %v851_v10, %v770_v1  ;;  %v793_v7 = vmul.f32 %v1714_v39, %v1714_v39  ;;  %v794_v10 = vmul.f32 %v1715_v19, %v1715_v19 }
 0x176   : > { %v687_v51 = vadd.f32 %v686_v16, %v1710_v49  ;;  %v724_v30 = vadd.f32 %v723_v14, %v1711_v38  ;;  %v816_v15 = vadd.f32 %v815_v11, %v771_v36  ;;  %v792_v16 = vmul.f32 %v1713_v53, %v1713_v53 }
 0x177   : > { %v853_v55 = vadd.f32 %v852_v26, %v772_v5  ;;  %v795_v38 = vmul.f32 %v1716_v23, %v1716_v23 }
 0x178   : > { %v688_v35 = vadd.f32 %v687_v51, %v1712_v33  ;;  %v725_v13 = vadd.f32 %v724_v30, %v1713_v53  ;;  %v817_v8 = vadd.f32 %v816_v15, %v773_v40  ;;  %v796_v30 = vmul.f32 %v1717_v20, %v1717_v20 }
 0x179   : > { %v854_v37 = vadd.f32 %v853_v55, %v774_v9 }
 0x17a   : > { %v689_v17 = vadd.f32 %v688_v35, %v1714_v39  ;;  %v726_v24 = vadd.f32 %v725_v13, %v1715_v19  ;;  %v818_v57 = vadd.f32 %v817_v8, %v775_v42  ;;  %v797_v42 = vmul.f32 %v1718_v43, %v1718_v43 }
 0x17b   : > { %v855_v59 = vadd.f32 %v854_v37, %v776_v44  ;;  %v798_v44 = vmul.f32 %v1719_v28, %v1719_v28  ;;  %v1077_v19 = vmov 1983009808  }
 0x17c   : > { %v819_v32 = vadd.f32 %v818_v57, %v777_v46  ;;  %v690_v22 = vadd.f32 %v689_v17, %v1716_v23  ;;  %v727_v41 = vadd.f32 %v726_v24, %v1717_v20  ;;  %v881_v24 = vunpack.c.l.s4 %v1077_v19 }
 0x17d   : > { %v856_v21 = vadd.f32 %v855_v59, %v778_v48  ;;  %v883_v57 = vlaneseq }
 0x17e   : > { %v820_v61 = vadd.f32 %v819_v32, %v779_v50  ;;  %v691_v12 = vadd.f32 %v690_v22, %v1718_v43  ;;  %v728_v45 = vadd.f32 %v727_v41, %v1719_v28 }
 0x17f   : > { %v857_v25 = vadd.f32 %v856_v21, %v780_v52  ;;  %v884_v23 = vshrl.u32 %v883_v57, 7 }
 0x180   : > { %v821_v27 = vadd.f32 %v820_v61, %v781_v54  ;;  %v692_v34 = vrot.slane %v691_v12, 4  ;;  %v729_v14 = vrot.slane %v728_v45, 4 }
 0x181   : > { %v858_v63 = vadd.f32 %v857_v25, %v782_v56 }
 0x182   : > { %v822_v31 = vadd.f32 %v821_v27, %v783_v58  ;;  %v693_v40 = vadd.f32 %v692_v34, %v691_v12  ;;  %v730_v9 = vadd.f32 %v729_v14, %v728_v45 }
 0x183   : > { %v859_v1 = vadd.f32 %v858_v63, %v784_v60  ;;  %v882_v60 = vunpack.c.0.s8 %v881_v24 }
 0x184   : > { %v823_v3 = vadd.f32 %v822_v31, %v785_v62  ;;  %v694_v53 = vrot.slane %v693_v40, 2  ;;  %v731_v13 = vrot.slane %v730_v9, 2 }
 0x185   : > { %v860_v47 = vadd.f32 %v859_v1, %v786_v0  ;;  %v885_v0 = vsub.s32 %v882_v60, %v884_v23 }
 0x186   : > { %v824_v36 = vadd.f32 %v823_v3, %v787_v2  ;;  %v695_v8 = vadd.f32 %v694_v53, %v693_v40  ;;  %v732_v37 = vadd.f32 %v731_v13, %v730_v9 }
 0x187   : > { %v861_v5 = vadd.f32 %v860_v47, %v788_v4  ;;  %v876_v4 = vld [vmem:[%s1667_s3] sm:$0xf] }
 0x188   : > { %v825_v49 = vadd.f32 %v824_v36, %v789_v6  ;;  %v696_v59 = vrot.slane %v695_v8, 1  ;;  %v733_v54 = vrot.slane %v732_v37, 1 }
 0x189   : > { %v862_v51 = vadd.f32 %v861_v5, %v790_v29 }
 0x18a   : > { %v826_v11 = vadd.f32 %v825_v49, %v791_v18  ;;  %v697_v22 = vadd.f32 %v696_v59, %v695_v8  ;;  %v734_v20 = vadd.f32 %v733_v54, %v732_v37 }
 0x18b   : > { %v863_v26 = vadd.f32 %v862_v51, %v792_v16 }
 0x18c   : > { %v827_v33 = vadd.f32 %v826_v11, %v793_v7 }
 0x18d   : > { %v864_v35 = vadd.f32 %v863_v26, %v794_v10 }
 0x18e   : > { %v828_v15 = vadd.f32 %v827_v33, %v795_v38 }
 0x18f   : > { %v865_v55 = vadd.f32 %v864_v35, %v796_v30 }
 0x190   : > { %v829_v46 = vadd.f32 %v828_v15, %v797_v42 }
 0x191   : > { %v866_v48 = vadd.f32 %v865_v55, %v798_v44 }
 0x192   : > { %v830_v50 = vrot.slane %v829_v46, 4 }
 0x193   : > { %v867_v52 = vrot.slane %v866_v48, 4 }
 0x194   : > { %v831_v39 = vadd.f32 %v830_v50, %v829_v46 }
 0x195   : > { %v868_v17 = vadd.f32 %v867_v52, %v866_v48 }
 0x196   : > { %v832_v56 = vrot.slane %v831_v39, 2 }
 0x197   : > { %v869_v32 = vrot.slane %v868_v17, 2 }
 0x198   : > { %v833_v21 = vadd.f32 %v832_v56, %v831_v39 }
 0x199   : > { %v870_v58 = vadd.f32 %v869_v32, %v868_v17 }
 0x19a   : > { %v834_v41 = vrot.slane %v833_v21, 1 }
 0x19b   : > { %v871_v61 = vrot.slane %v870_v58, 1 }
 0x19c   : > { %v835_v25 = vadd.f32 %v834_v41, %v833_v21 }
 0x19d   : > { %v872_v62 = vadd.f32 %v871_v61, %v870_v58 }
 0x19e   : > { %v874_v27 = vsel %vm873_vm0, %v697_v22, %v835_v25 }
 0x19f   : > { %v875_v63 = vsel %vm873_vm0, %v734_v20, %v872_v62 }
 0x1a0   : > { %v879_v2 = vcombine.low %v874_v27, %v875_v63 }
 0x1a2   : > { %v886_v43 = vrot.slane %v879_v2, %v885_v0 }
 0x1a4   : > { %v888_v12 = vadd.f32 %v886_v43, %v876_v4 }
 0x1a6   : > { %889 = vst [vmem:[%s1667_s3] sm:$0xf] %v888_v12 }
 0x1a7 PF: > { %s14_s12 = sadd.s32 1, %s1073_s12  }
 0x1a8   : > { %p11_p5 = scmp.ge.s32.totalorder %s14_s12, 4  }
 0x1aa   :  { %13 = sbr.rel (!%p11_p5) target bundleno = 1 (0x1), region = 70 }

// kernel: large_kernel_forward.3
= control target key start
LH: loop header
LB: loop body
LE: loop exit
PB: predicated region body
PF: predicated region fallthrough
CT: control target
= control target key end

     0   :  { %s626_s12 = smov 0   ;;  %s889_s0 = inlined_call_operand.vmem [shape: f32[512,256], index: 0, kind: input, shape index: {}]   ;;  %s890_s1 = inlined_call_operand.vmem [shape: f32[1,256], index: 1, kind: input, shape index: {}]   ;;  %s891_s2 = inlined_call_operand.vmem [shape: f32[1,256], index: 2, kind: input, shape index: {}]   ;;  %s892_s3 = inlined_call_operand.vmem [shape: f32[512,128], index: 3, kind: output, shape index: {}]  }
   0x1 LB: > { %s577_s13 = sadd.s32 4294967295, %s604_s12   ;;  %p581_p0 = scmp.ge.s32.totalorder %s604_s12, 1  ;;  %s604_s12 = sphi %s626_s12, %s13_s12  }
   0x2   : > { %p139_p1 = scmp.lt.s32.totalorder %s604_s12, 3 }
   0x4   : > { %p140_p2 = pnand %p581_p0, %p139_p1 }
   0x5   : > { %s582_s14 = sshll.u32 (!%p140_p2), %s577_s13, 5  ;;  %v243_v0 = vlaneseq (!%p140_p2)  ;;  %v241_v2 = vld [vmem:[%s890_s1] sm:$0x3] (!%p140_p2) }
   0x6   : > { %143 = sbr.rel (%p140_p2) target bundleno = 79 (0x4f), region = 32  ;;  %p165_p3 = scmp.lt.s32.totalorder (!%p140_p2), %s582_s14, 63  ;;  %v317_v3 = vld [vmem:[%s891_s2] sm:$0x3] (!%p140_p2) }
   0x7   : > { %v244_v1 = vshrl.u32 (!%p140_p2), %v243_v0, 7 }
   0x9   : > { %v245_v4 = vsub.s32 (!%p140_p2), 0, %v244_v1  ;;  %v249_v5 = vsub.s32 (!%p140_p2), 1, %v244_v1 }
   0xb   : > { %v648_v6 = vrot.slane (!%p140_p2), %v241_v2, %v245_v4  ;;  %v650_v7 = vrot.slane (!%p140_p2), %v241_v2, %v249_v5  ;;  %v652_v8 = vrot.slane (!%p140_p2), %v317_v3, %v245_v4  ;;  %v654_v9 = vrot.slane (!%p140_p2), %v317_v3, %v249_v5 }
   0xd   : > { %s894_s14 = smov (!%p165_p3, %s582_s14), 63 }
   0xe   : > { %s589_s19 = sshll.u32 %s894_s14, 4  ;;  %s586_s23 = sshll.u32 %s894_s14, 3 }
   0xf   : > { %s646_s22 = scalar_lea.vmem %s889_s0, %s589_s19  ;;  %s686_s26 = scalar_lea.vmem %s892_s3, %s586_s23 }
  0x10   : > { %v177_v10 = vld [vmem:[%s646_s22] sm:$0xff]  ;;  %v178_v11 = vld [vmem:[%s646_s22 + $0x8] sm:$0xff]  ;;  %v179_v12 = vld [vmem:[%s646_s22 + $0x10] sm:$0xff] }
  0x11   : > { %v253_v13 = vmul.f32 %v648_v6, %v177_v10  ;;  %v254_v14 = vmul.f32 %v650_v7, %v178_v11  ;;  %v180_v15 = vld [vmem:[%s646_s22 + $0x18] sm:$0xff]  ;;  %v255_v16 = vmul.f32 %v648_v6, %v179_v12  ;;  %v181_v17 = vld [vmem:[%s646_s22 + $0x20] sm:$0xff]  ;;  %v182_v18 = vld [vmem:[%s646_s22 + $0x28] sm:$0xff] }
  0x12   : > { %v256_v19 = vmul.f32 %v650_v7, %v180_v15  ;;  %v257_v20 = vmul.f32 %v648_v6, %v181_v17  ;;  %v258_v21 = vmul.f32 %v650_v7, %v182_v18  ;;  %v183_v22 = vld [vmem:[%s646_s22 + $0x30] sm:$0xff]  ;;  %v184_v23 = vld [vmem:[%s646_s22 + $0x38] sm:$0xff]  ;;  %v185_v32 = vld [vmem:[%s646_s22 + $0x40] sm:$0xff] }
  0x13   : > { %v329_v24 = vadd.f32 %v652_v8, %v253_v13  ;;  %v330_v25 = vadd.f32 %v654_v9, %v254_v14  ;;  %v331_v26 = vadd.f32 %v652_v8, %v255_v16  ;;  %v259_v27 = vmul.f32 %v648_v6, %v183_v22  ;;  %v186_v33 = vld [vmem:[%s646_s22 + $0x48] sm:$0xff]  ;;  %v187_v38 = vld [vmem:[%s646_s22 + $0x50] sm:$0xff]  ;;  %v188_v43 = vld [vmem:[%s646_s22 + $0x58] sm:$0xff] }
  0x14   : > { %v332_v28 = vadd.f32 %v654_v9, %v256_v19  ;;  %v333_v29 = vadd.f32 %v652_v8, %v257_v20  ;;  %v334_v30 = vadd.f32 %v654_v9, %v258_v21  ;;  %v260_v31 = vmul.f32 %v650_v7, %v184_v23  ;;  %v189_v44 = vld [vmem:[%s646_s22 + $0x60] sm:$0xff]  ;;  %v190_v49 = vld [vmem:[%s646_s22 + $0x68] sm:$0xff]  ;;  %v191_v50 = vld [vmem:[%s646_s22 + $0x70] sm:$0xff] }
  0x15   : > { %v393_v34 = vmax.f32 %v329_v24, 0.0  ;;  %v394_v35 = vmax.f32 %v330_v25, 0.0  ;;  %v395_v36 = vmax.f32 %v331_v26, 0.0  ;;  %v335_v37 = vadd.f32 %v652_v8, %v259_v27  ;;  %v192_v59 = vld [vmem:[%s646_s22 + $0x78] sm:$0xff]  ;;  %v193_v0 = vld [vmem:[%s646_s22 + $0x80] sm:$0xff]  ;;  %v194_v5 = vld [vmem:[%s646_s22 + $0x88] sm:$0xff] }
  0x16   : > { %v396_v39 = vmax.f32 %v332_v28, 0.0  ;;  %v397_v40 = vmax.f32 %v333_v29, 0.0  ;;  %v398_v41 = vmax.f32 %v334_v30, 0.0  ;;  %v336_v42 = vadd.f32 %v654_v9, %v260_v31  ;;  %v195_v14 = vld [vmem:[%s646_s22 + $0x90] sm:$0xff]  ;;  %v196_v15 = vld [vmem:[%s646_s22 + $0x98] sm:$0xff]  ;;  %v197_v20 = vld [vmem:[%s646_s22 + $0xa0] sm:$0xff] }
  0x17   : > { %v457_v45 = vadd.f32 %v394_v35, %v393_v34  ;;  %v399_v46 = vmax.f32 %v335_v37, 0.0  ;;  %v261_v47 = vmul.f32 %v648_v6, %v185_v32  ;;  %v262_v48 = vmul.f32 %v650_v7, %v186_v33  ;;  %v198_v25 = vld [vmem:[%s646_s22 + $0xa8] sm:$0xff]  ;;  %v199_v30 = vld [vmem:[%s646_s22 + $0xb0] sm:$0xff]  ;;  %v200_v35 = vld [vmem:[%s646_s22 + $0xb8] sm:$0xff] }
  0x18   : > { %v458_v51 = vadd.f32 %v396_v39, %v395_v36  ;;  %v459_v52 = vadd.f32 %v398_v41, %v397_v40  ;;  %v400_v53 = vmax.f32 %v336_v42, 0.0  ;;  %v263_v54 = vmul.f32 %v648_v6, %v187_v38  ;;  %v201_v40 = vld [vmem:[%s646_s22 + $0xc0] sm:$0xff] }
  0x19   : > { %489 = vst [vmem:[%s686_s26] sm:$0xff] %v457_v45  ;;  %v337_v55 = vadd.f32 %v652_v8, %v261_v47  ;;  %v338_v56 = vadd.f32 %v654_v9, %v262_v48  ;;  %v264_v57 = vmul.f32 %v650_v7, %v188_v43  ;;  %v265_v58 = vmul.f32 %v648_v6, %v189_v44  ;;  %v202_v45 = vld [vmem:[%s646_s22 + $0xc8] sm:$0xff] }
  0x1a   : > { %490 = vst [vmem:[%s686_s26 + $0x8] sm:$0xff] %v458_v51  ;;  %491 = vst [vmem:[%s686_s26 + $0x10] sm:$0xff] %v459_v52  ;;  %v460_v60 = vadd.f32 %v400_v53, %v399_v46  ;;  %v339_v61 = vadd.f32 %v652_v8, %v263_v54  ;;  %v266_v62 = vmul.f32 %v650_v7, %v190_v49  ;;  %v204_v51 = vld [vmem:[%s646_s22 + $0xd8] sm:$0xff] }
  0x1b   : > { %v267_v63 = vmul.f32 %v648_v6, %v191_v50  ;;  %v401_v1 = vmax.f32 %v337_v55, 0.0  ;;  %v402_v2 = vmax.f32 %v338_v56, 0.0  ;;  %v340_v3 = vadd.f32 %v654_v9, %v264_v57  ;;  %v203_v50 = vld [vmem:[%s646_s22 + $0xd0] sm:$0xff]  ;;  %v205_v56 = vld [vmem:[%s646_s22 + $0xe0] sm:$0xff] }
  0x1c   : > { %v341_v4 = vadd.f32 %v652_v8, %v265_v58  ;;  %492 = vst [vmem:[%s686_s26 + $0x18] sm:$0xff] %v460_v60  ;;  %v403_v10 = vmax.f32 %v339_v61, 0.0  ;;  %v342_v11 = vadd.f32 %v654_v9, %v266_v62  ;;  %v268_v12 = vmul.f32 %v650_v7, %v192_v59  ;;  %v206_v61 = vld [vmem:[%s646_s22 + $0xe8] sm:$0xff] }
  0x1d   : > { %v343_v13 = vadd.f32 %v652_v8, %v267_v63  ;;  %v461_v16 = vadd.f32 %v402_v2, %v401_v1  ;;  %v404_v17 = vmax.f32 %v340_v3, 0.0  ;;  %v269_v19 = vmul.f32 %v648_v6, %v193_v0  ;;  %v207_v2 = vld [vmem:[%s646_s22 + $0xf0] sm:$0xff] }
  0x1e   : > { %v405_v18 = vmax.f32 %v341_v4, 0.0  ;;  %v406_v21 = vmax.f32 %v342_v11, 0.0  ;;  %v344_v22 = vadd.f32 %v654_v9, %v268_v12  ;;  %v270_v24 = vmul.f32 %v650_v7, %v194_v5  ;;  %v208_v11 = vld [vmem:[%s646_s22 + $0xf8] sm:$0xff] }
  0x1f   : > { %v407_v23 = vmax.f32 %v343_v13, 0.0  ;;  %493 = vst [vmem:[%s686_s26 + $0x20] sm:$0xff] %v461_v16  ;;  %v462_v26 = vadd.f32 %v404_v17, %v403_v10  ;;  %v345_v27 = vadd.f32 %v652_v8, %v269_v19  ;;  %v271_v28 = vmul.f32 %v648_v6, %v195_v14  ;;  %v209_v16 = vld [vmem:[%s646_s22 + $0x100] sm:$0xff] }
  0x20   : > { %v272_v29 = vmul.f32 %v650_v7, %v196_v15  ;;  %v463_v31 = vadd.f32 %v406_v21, %v405_v18  ;;  %v408_v32 = vmax.f32 %v344_v22, 0.0  ;;  %v346_v33 = vadd.f32 %v654_v9, %v270_v24  ;;  %v210_v21 = vld [vmem:[%s646_s22 + $0x108] sm:$0xff] }
  0x21   : > { %v273_v34 = vmul.f32 %v648_v6, %v197_v20  ;;  %494 = vst [vmem:[%s686_s26 + $0x28] sm:$0xff] %v462_v26  ;;  %v409_v36 = vmax.f32 %v345_v27, 0.0  ;;  %v347_v37 = vadd.f32 %v652_v8, %v271_v28  ;;  %v274_v39 = vmul.f32 %v650_v7, %v198_v25  ;;  %v211_v26 = vld [vmem:[%s646_s22 + $0x110] sm:$0xff]  ;;  %v212_v27 = vld [vmem:[%s646_s22 + $0x118] sm:$0xff] }
  0x22   : > { %v348_v38 = vadd.f32 %v654_v9, %v272_v29  ;;  %495 = vst [vmem:[%s686_s26 + $0x30] sm:$0xff] %v463_v31  ;;  %v464_v41 = vadd.f32 %v408_v32, %v407_v23  ;;  %v410_v42 = vmax.f32 %v346_v33, 0.0  ;;  %v275_v44 = vmul.f32 %v648_v6, %v199_v30  ;;  %v213_v32 = vld [vmem:[%s646_s22 + $0x120] sm:$0xff] }
  0x23   : > { %v349_v43 = vadd.f32 %v652_v8, %v273_v34  ;;  %v411_v46 = vmax.f32 %v347_v37, 0.0  ;;  %v350_v48 = vadd.f32 %v654_v9, %v274_v39  ;;  %v276_v49 = vmul.f32 %v650_v7, %v200_v35  ;;  %v214_v37 = vld [vmem:[%s646_s22 + $0x128] sm:$0xff] }
  0x24   : > { %v412_v47 = vmax.f32 %v348_v38, 0.0  ;;  %496 = vst [vmem:[%s686_s26 + $0x38] sm:$0xff] %v464_v41  ;;  %v465_v52 = vadd.f32 %v410_v42, %v409_v36  ;;  %v351_v54 = vadd.f32 %v652_v8, %v275_v44  ;;  %v277_v55 = vmul.f32 %v648_v6, %v201_v40  ;;  %v215_v42 = vld [vmem:[%s646_s22 + $0x130] sm:$0xff] }
  0x25   : > { %v413_v53 = vmax.f32 %v349_v43, 0.0  ;;  %v414_v58 = vmax.f32 %v350_v48, 0.0  ;;  %v352_v59 = vadd.f32 %v654_v9, %v276_v49  ;;  %v278_v60 = vmul.f32 %v650_v7, %v202_v45 }
  0x26   : > { %v466_v57 = vadd.f32 %v412_v47, %v411_v46  ;;  %497 = vst [vmem:[%s686_s26 + $0x40] sm:$0xff] %v465_v52  ;;  %v415_v62 = vmax.f32 %v351_v54, 0.0  ;;  %v353_v63 = vadd.f32 %v652_v8, %v277_v55  ;;  %v279_v0 = vmul.f32 %v648_v6, %v203_v50  ;;  %v216_v47 = vld [vmem:[%s646_s22 + $0x138] sm:$0xff]  ;;  %v217_v52 = vld [vmem:[%s646_s22 + $0x140] sm:$0xff] }
  0x27   : > { %v280_v1 = vmul.f32 %v650_v7, %v204_v51  ;;  %v467_v3 = vadd.f32 %v414_v58, %v413_v53  ;;  %v416_v4 = vmax.f32 %v352_v59, 0.0  ;;  %v354_v5 = vadd.f32 %v654_v9, %v278_v60 }
  0x28   : > { %498 = vst [vmem:[%s686_s26 + $0x48] sm:$0xff] %v466_v57  ;;  %v281_v10 = vmul.f32 %v648_v6, %v205_v56  ;;  %v417_v12 = vmax.f32 %v353_v63, 0.0  ;;  %v355_v13 = vadd.f32 %v652_v8, %v279_v0  ;;  %v282_v15 = vmul.f32 %v650_v7, %v206_v61  ;;  %v218_v57 = vld [vmem:[%s646_s22 + $0x148] sm:$0xff]  ;;  %v220_v63 = vld [vmem:[%s646_s22 + $0x158] sm:$0xff] }
  0x29   : > { %v356_v14 = vadd.f32 %v654_v9, %v280_v1  ;;  %499 = vst [vmem:[%s686_s26 + $0x50] sm:$0xff] %v467_v3  ;;  %v468_v17 = vadd.f32 %v416_v4, %v415_v62  ;;  %v418_v18 = vmax.f32 %v354_v5, 0.0  ;;  %v283_v20 = vmul.f32 %v648_v6, %v207_v2  ;;  %v219_v62 = vld [vmem:[%s646_s22 + $0x150] sm:$0xff]  ;;  %v221_v4 = vld [vmem:[%s646_s22 + $0x160] sm:$0xff] }
  0x2a   : > { %v357_v19 = vadd.f32 %v652_v8, %v281_v10  ;;  %v419_v22 = vmax.f32 %v355_v13, 0.0  ;;  %v358_v24 = vadd.f32 %v654_v9, %v282_v15  ;;  %v284_v25 = vmul.f32 %v650_v7, %v208_v11  ;;  %v222_v13 = vld [vmem:[%s646_s22 + $0x168] sm:$0xff] }
  0x2b   : > { %v420_v23 = vmax.f32 %v356_v14, 0.0  ;;  %500 = vst [vmem:[%s686_s26 + $0x58] sm:$0xff] %v468_v17  ;;  %v469_v28 = vadd.f32 %v418_v18, %v417_v12  ;;  %v359_v30 = vadd.f32 %v652_v8, %v283_v20  ;;  %v285_v31 = vmul.f32 %v648_v6, %v209_v16  ;;  %v223_v18 = vld [vmem:[%s646_s22 + $0x170] sm:$0xff] }
  0x2c   : > { %v421_v29 = vmax.f32 %v357_v19, 0.0  ;;  %v422_v34 = vmax.f32 %v358_v24, 0.0  ;;  %v360_v35 = vadd.f32 %v654_v9, %v284_v25  ;;  %v286_v36 = vmul.f32 %v650_v7, %v210_v21 }
  0x2d   : > { %v470_v33 = vadd.f32 %v420_v23, %v419_v22  ;;  %501 = vst [vmem:[%s686_s26 + $0x60] sm:$0xff] %v469_v28  ;;  %v423_v38 = vmax.f32 %v359_v30, 0.0  ;;  %v361_v39 = vadd.f32 %v652_v8, %v285_v31  ;;  %v287_v40 = vmul.f32 %v648_v6, %v211_v26  ;;  %v224_v23 = vld [vmem:[%s646_s22 + $0x178] sm:$0xff]  ;;  %v225_v28 = vld [vmem:[%s646_s22 + $0x180] sm:$0xff] }
  0x2e   : > { %v288_v41 = vmul.f32 %v650_v7, %v212_v27  ;;  %v471_v43 = vadd.f32 %v422_v34, %v421_v29  ;;  %v424_v44 = vmax.f32 %v360_v35, 0.0  ;;  %v362_v45 = vadd.f32 %v654_v9, %v286_v36 }
  0x2f   : > { %502 = vst [vmem:[%s686_s26 + $0x68] sm:$0xff] %v470_v33  ;;  %v289_v46 = vmul.f32 %v648_v6, %v213_v32  ;;  %v425_v48 = vmax.f32 %v361_v39, 0.0  ;;  %v363_v49 = vadd.f32 %v652_v8, %v287_v40  ;;  %v290_v51 = vmul.f32 %v650_v7, %v214_v37  ;;  %v226_v33 = vld [vmem:[%s646_s22 + $0x188] sm:$0xff]  ;;  %v228_v39 = vld [vmem:[%s646_s22 + $0x198] sm:$0xff] }
  0x30   : > { %v364_v50 = vadd.f32 %v654_v9, %v288_v41  ;;  %503 = vst [vmem:[%s686_s26 + $0x70] sm:$0xff] %v471_v43  ;;  %v472_v53 = vadd.f32 %v424_v44, %v423_v38  ;;  %v426_v54 = vmax.f32 %v362_v45, 0.0  ;;  %v291_v56 = vmul.f32 %v648_v6, %v215_v42  ;;  %v227_v38 = vld [vmem:[%s646_s22 + $0x190] sm:$0xff]  ;;  %v229_v44 = vld [vmem:[%s646_s22 + $0x1a0] sm:$0xff] }
  0x31   : > { %v365_v55 = vadd.f32 %v652_v8, %v289_v46  ;;  %v427_v58 = vmax.f32 %v363_v49, 0.0  ;;  %v366_v60 = vadd.f32 %v654_v9, %v290_v51  ;;  %v292_v61 = vmul.f32 %v650_v7, %v216_v47  ;;  %v230_v49 = vld [vmem:[%s646_s22 + $0x1a8] sm:$0xff] }
  0x32   : > { %v428_v59 = vmax.f32 %v364_v50, 0.0  ;;  %504 = vst [vmem:[%s686_s26 + $0x78] sm:$0xff] %v472_v53  ;;  %v473_v0 = vadd.f32 %v426_v54, %v425_v48  ;;  %v367_v2 = vadd.f32 %v652_v8, %v291_v56  ;;  %v293_v3 = vmul.f32 %v648_v6, %v217_v52  ;;  %v231_v54 = vld [vmem:[%s646_s22 + $0x1b0] sm:$0xff] }
  0x33   : > { %v429_v1 = vmax.f32 %v365_v55, 0.0  ;;  %v430_v10 = vmax.f32 %v366_v60, 0.0  ;;  %v368_v11 = vadd.f32 %v654_v9, %v292_v61  ;;  %v294_v12 = vmul.f32 %v650_v7, %v218_v57 }
  0x34   : > { %v474_v5 = vadd.f32 %v428_v59, %v427_v58  ;;  %505 = vst [vmem:[%s686_s26 + $0x80] sm:$0xff] %v473_v0  ;;  %v431_v14 = vmax.f32 %v367_v2, 0.0  ;;  %v369_v15 = vadd.f32 %v652_v8, %v293_v3  ;;  %v295_v16 = vmul.f32 %v648_v6, %v219_v62  ;;  %v232_v59 = vld [vmem:[%s646_s22 + $0x1b8] sm:$0xff]  ;;  %v233_v0 = vld [vmem:[%s646_s22 + $0x1c0] sm:$0xff] }
  0x35   : > { %v296_v17 = vmul.f32 %v650_v7, %v220_v63  ;;  %v475_v19 = vadd.f32 %v430_v10, %v429_v1  ;;  %v432_v20 = vmax.f32 %v368_v11, 0.0  ;;  %v370_v21 = vadd.f32 %v654_v9, %v294_v12 }
  0x36   : > { %506 = vst [vmem:[%s686_s26 + $0x88] sm:$0xff] %v474_v5  ;;  %v297_v22 = vmul.f32 %v648_v6, %v221_v4  ;;  %v433_v24 = vmax.f32 %v369_v15, 0.0  ;;  %v371_v25 = vadd.f32 %v652_v8, %v295_v16  ;;  %v298_v27 = vmul.f32 %v650_v7, %v222_v13  ;;  %v234_v5 = vld [vmem:[%s646_s22 + $0x1c8] sm:$0xff]  ;;  %v236_v15 = vld [vmem:[%s646_s22 + $0x1d8] sm:$0xff] }
  0x37   : > { %v372_v26 = vadd.f32 %v654_v9, %v296_v17  ;;  %507 = vst [vmem:[%s686_s26 + $0x90] sm:$0xff] %v475_v19  ;;  %v476_v29 = vadd.f32 %v432_v20, %v431_v14  ;;  %v434_v30 = vmax.f32 %v370_v21, 0.0  ;;  %v299_v32 = vmul.f32 %v648_v6, %v223_v18  ;;  %v235_v14 = vld [vmem:[%s646_s22 + $0x1d0] sm:$0xff]  ;;  %v237_v20 = vld [vmem:[%s646_s22 + $0x1e0] sm:$0xff] }
  0x38   : > { %v373_v31 = vadd.f32 %v652_v8, %v297_v22  ;;  %v435_v34 = vmax.f32 %v371_v25, 0.0  ;;  %v374_v36 = vadd.f32 %v654_v9, %v298_v27  ;;  %v300_v37 = vmul.f32 %v650_v7, %v224_v23  ;;  %v238_v25 = vld [vmem:[%s646_s22 + $0x1e8] sm:$0xff] }
  0x39   : > { %v436_v35 = vmax.f32 %v372_v26, 0.0  ;;  %508 = vst [vmem:[%s686_s26 + $0x98] sm:$0xff] %v476_v29  ;;  %v477_v40 = vadd.f32 %v434_v30, %v433_v24  ;;  %v375_v42 = vadd.f32 %v652_v8, %v299_v32  ;;  %v301_v43 = vmul.f32 %v648_v6, %v225_v28  ;;  %v239_v30 = vld [vmem:[%s646_s22 + $0x1f0] sm:$0xff] }
  0x3a   : > { %v437_v41 = vmax.f32 %v373_v31, 0.0  ;;  %v438_v46 = vmax.f32 %v374_v36, 0.0  ;;  %v376_v47 = vadd.f32 %v654_v9, %v300_v37  ;;  %v302_v48 = vmul.f32 %v650_v7, %v226_v33 }
  0x3b   : > { %v478_v45 = vadd.f32 %v436_v35, %v435_v34  ;;  %509 = vst [vmem:[%s686_s26 + $0xa0] sm:$0xff] %v477_v40  ;;  %v439_v50 = vmax.f32 %v375_v42, 0.0  ;;  %v377_v51 = vadd.f32 %v652_v8, %v301_v43  ;;  %v303_v52 = vmul.f32 %v648_v6, %v227_v38  ;;  %v240_v35 = vld [vmem:[%s646_s22 + $0x1f8] sm:$0xff] }
  0x3c   : > { %v304_v53 = vmul.f32 %v650_v7, %v228_v39  ;;  %v479_v55 = vadd.f32 %v438_v46, %v437_v41  ;;  %v440_v56 = vmax.f32 %v376_v47, 0.0  ;;  %v378_v57 = vadd.f32 %v654_v9, %v302_v48 }
  0x3d   : > { %510 = vst [vmem:[%s686_s26 + $0xa8] sm:$0xff] %v478_v45  ;;  %v305_v58 = vmul.f32 %v648_v6, %v229_v44  ;;  %v441_v60 = vmax.f32 %v377_v51, 0.0  ;;  %v379_v61 = vadd.f32 %v652_v8, %v303_v52  ;;  %v306_v63 = vmul.f32 %v650_v7, %v230_v49 }
  0x3e   : > { %v380_v62 = vadd.f32 %v654_v9, %v304_v53  ;;  %511 = vst [vmem:[%s686_s26 + $0xb0] sm:$0xff] %v479_v55  ;;  %v480_v1 = vadd.f32 %v440_v56, %v439_v50  ;;  %v442_v2 = vmax.f32 %v378_v57, 0.0  ;;  %v307_v4 = vmul.f32 %v648_v6, %v231_v54 }
  0x3f   : > { %v381_v3 = vadd.f32 %v652_v8, %v305_v58  ;;  %v443_v10 = vmax.f32 %v379_v61, 0.0  ;;  %v382_v12 = vadd.f32 %v654_v9, %v306_v63  ;;  %v308_v13 = vmul.f32 %v650_v7, %v232_v59 }
  0x40   : > { %v444_v11 = vmax.f32 %v380_v62, 0.0  ;;  %512 = vst [vmem:[%s686_s26 + $0xb8] sm:$0xff] %v480_v1  ;;  %v481_v16 = vadd.f32 %v442_v2, %v441_v60  ;;  %v383_v18 = vadd.f32 %v652_v8, %v307_v4  ;;  %v309_v19 = vmul.f32 %v648_v6, %v233_v0 }
  0x41   : > { %v445_v17 = vmax.f32 %v381_v3, 0.0  ;;  %v446_v22 = vmax.f32 %v382_v12, 0.0  ;;  %v384_v23 = vadd.f32 %v654_v9, %v308_v13  ;;  %v310_v24 = vmul.f32 %v650_v7, %v234_v5 }
  0x42   : > { %v482_v21 = vadd.f32 %v444_v11, %v443_v10  ;;  %513 = vst [vmem:[%s686_s26 + $0xc0] sm:$0xff] %v481_v16  ;;  %v447_v26 = vmax.f32 %v383_v18, 0.0  ;;  %v385_v27 = vadd.f32 %v652_v8, %v309_v19  ;;  %v311_v28 = vmul.f32 %v648_v6, %v235_v14 }
  0x43   : > { %v312_v29 = vmul.f32 %v650_v7, %v236_v15  ;;  %v483_v31 = vadd.f32 %v446_v22, %v445_v17  ;;  %v448_v32 = vmax.f32 %v384_v23, 0.0  ;;  %v386_v33 = vadd.f32 %v654_v9, %v310_v24 }
  0x44   : > { %514 = vst [vmem:[%s686_s26 + $0xc8] sm:$0xff] %v482_v21  ;;  %v313_v34 = vmul.f32 %v648_v6, %v237_v20  ;;  %v449_v36 = vmax.f32 %v385_v27, 0.0  ;;  %v387_v37 = vadd.f32 %v652_v8, %v311_v28  ;;  %v314_v39 = vmul.f32 %v650_v7, %v238_v25 }
  0x45   : > { %v388_v38 = vadd.f32 %v654_v9, %v312_v29  ;;  %515 = vst [vmem:[%s686_s26 + $0xd0] sm:$0xff] %v483_v31  ;;  %v484_v40 = vadd.f32 %v448_v32, %v447_v26  ;;  %v450_v41 = vmax.f32 %v386_v33, 0.0  ;;  %v315_v43 = vmul.f32 %v648_v6, %v239_v30 }
  0x46   : > { %v389_v42 = vadd.f32 %v652_v8, %v313_v34  ;;  %v451_v44 = vmax.f32 %v387_v37, 0.0  ;;  %v390_v46 = vadd.f32 %v654_v9, %v314_v39  ;;  %v316_v47 = vmul.f32 %v650_v7, %v240_v35 }
  0x47   : > { %v452_v45 = vmax.f32 %v388_v38, 0.0  ;;  %516 = vst [vmem:[%s686_s26 + $0xd8] sm:$0xff] %v484_v40  ;;  %v485_v48 = vadd.f32 %v450_v41, %v449_v36  ;;  %v391_v50 = vadd.f32 %v652_v8, %v315_v43 }
  0x48   : > { %v453_v49 = vmax.f32 %v389_v42, 0.0  ;;  %v454_v52 = vmax.f32 %v390_v46, 0.0  ;;  %v392_v53 = vadd.f32 %v654_v9, %v316_v47 }
  0x49   : > { %v486_v51 = vadd.f32 %v452_v45, %v451_v44  ;;  %517 = vst [vmem:[%s686_s26 + $0xe0] sm:$0xff] %v485_v48  ;;  %v455_v54 = vmax.f32 %v391_v50, 0.0 }
  0x4a   : > { %v487_v6 = vadd.f32 %v454_v52, %v453_v49  ;;  %v456_v55 = vmax.f32 %v392_v53, 0.0 }
  0x4b   : > { %518 = vst [vmem:[%s686_s26 + $0xe8] sm:$0xff] %v486_v51 }
  0x4c   : > { %519 = vst [vmem:[%s686_s26 + $0xf0] sm:$0xff] %v487_v6  ;;  %v488_v56 = vadd.f32 %v456_v55, %v455_v54 }
  0x4e   : > { %520 = vst [vmem:[%s686_s26 + $0xf8] sm:$0xff] %v488_v56 }
  0x4f PF: > { %s13_s12 = sadd.s32 1, %s604_s12  }
  0x50   : > { %p10_p4 = scmp.ge.s32.totalorder %s13_s12, 4  }
  0x52   :  { %12 = sbr.rel (!%p10_p4) target bundleno = 1 (0x1), region = 62 }

</bundles_post_ra>
